<compile_context>
chip_gen: v7x
topology: tpu7x:2x2x1
jax: 0.10.0
libtpu: 0.0.40
codegen_flags: <defaults>
</compile_context>

<pallas_src>
import math
import functools

import jax
import jax.numpy as jnp
from jax import lax
from jax.experimental import pallas as pl
from jax.experimental.pallas import tpu as pltpu

LANE = 128
_TM_CAP = 1024
_WIDEN = 8


def _round_up(v, m):
    return -(-v // m) * m


def _cdiv(a, b):
    return -(-a // b)


# ----------------------------------------------------------------------------
# Pallas kernels
# ----------------------------------------------------------------------------

def _conv_kernel(x_ref, w_ref, b_ref, o_ref, *, relu):
    """Single-K-step matmul: o = [relu](x @ w + b), bf16 store."""
    y = jnp.dot(x_ref[...], w_ref[...], preferred_element_type=jnp.float32)
    y = y + b_ref[...]
    if relu:
        y = jnp.maximum(y, 0.0)
    o_ref[...] = y.astype(o_ref.dtype)


def _conv_stats_kernel(x_ref, w_ref, b_ref, o_ref, st_ref, *, tm, m_valid):
    """Matmul that also emits masked per-tile column sum / sum-of-squares
    (2 rows only) for the fused BatchNorm statistics pass."""
    i = pl.program_id(0)  # top level only (never inside pl.when / lax.cond)
    y = jnp.dot(x_ref[...], w_ref[...], preferred_element_type=jnp.float32)
    y = y + b_ref[...]
    o_ref[...] = y.astype(o_ref.dtype)
    rows = lax.broadcasted_iota(jnp.int32, (tm, 1), 0) + i * tm
    ym = jnp.where(rows < m_valid, y, 0.0)
    st_ref[0, 0:1, :] = jnp.sum(ym, axis=0, keepdims=True)
    st_ref[0, 1:2, :] = jnp.sum(ym * ym, axis=0, keepdims=True)


def _affine_kernel(x_ref, s_ref, t_ref, o_ref, *, relu):
    """y = scale*x + shift (+ReLU); f32 math in registers, bf16 storage."""
    y = x_ref[...].astype(jnp.float32) * s_ref[...] + t_ref[...]
    if relu:
        y = jnp.maximum(y, 0.0)
    o_ref[...] = y.astype(o_ref.dtype)


def _affine_res_kernel(x_ref, r_ref, s_ref, t_ref, o_ref, *, relu):
    y = (x_ref[...].astype(jnp.float32) * s_ref[...] + t_ref[...]
         + r_ref[...].astype(jnp.float32))
    if relu:
        y = jnp.maximum(y, 0.0)
    o_ref[...] = y.astype(o_ref.dtype)


# ----------------------------------------------------------------------------
# Pallas call helpers (trace-level; used inside cached jitted config fns)
# ----------------------------------------------------------------------------

def _im2col(x, Kh, Kw, stride, padding):
    """NHWC -> (N*Ho*Wo, Kh*Kw*Cin) bf16 patches (pure reshape for 1x1)."""
    x = x.astype(jnp.bfloat16)
    N, H, W, Cin = x.shape
    if padding:
        x = jnp.pad(x, ((0, 0), (padding, padding), (padding, padding), (0, 0)))
    Hp, Wp = H + 2 * padding, W + 2 * padding
    Ho = (Hp - Kh) // stride + 1
    Wo = (Wp - Kw) // stride + 1
    if Kh == 1 and Kw == 1 and stride == 1:
        return x.reshape(N * Ho * Wo, Cin), Ho, Wo
    # TODO(synk): implicit im2col (shifted-window BlockSpec grid over kh/kw taps)
    # would avoid materializing Kh*Kw x the activation bytes for KxK convs.
    cols = [x[:, kh:kh + (Ho - 1) * stride + 1:stride,
              kw:kw + (Wo - 1) * stride + 1:stride, :]
            for kh in range(Kh) for kw in range(Kw)]
    patches = jnp.stack(cols, axis=3).reshape(N * Ho * Wo, Kh * Kw * Cin)
    return patches, Ho, Wo


def _mm_pallas(patches, w, bias, with_stats, relu=False):
    """(patches @ w + bias) on the MXU.  patches: (M, K) bf16 (M, K un-padded),
    w: (K, CP) bf16 pre-padded along Cout, bias: (1, CP) f32.
    Returns a bf16 (M8, CP) slab (rows >= M are junk and sliced off later)."""
    M, K = patches.shape
    Kw_, CP = w.shape
    assert Kw_ == K
    M8 = _round_up(M, 8)
    TM = min(_TM_CAP, M8)
    nm = _cdiv(M8, TM)
    if nm == 1 and M8 >= 256:
        # keep >= 2 independent row tiles so both v7x TensorCores get work
        TM = _round_up(_cdiv(M8, 2), 8)
        nm = _cdiv(M8, TM)

    in_specs = [
        pl.BlockSpec((TM, K), lambda i: (i, 0)),
        pl.BlockSpec((K, CP), lambda i: (0, 0)),
        pl.BlockSpec((1, CP), lambda i: (0, 0)),
    ]
    cparams = pltpu.CompilerParams(dimension_semantics=("parallel",))

    if with_stats:
        kern = functools.partial(_conv_stats_kernel, tm=TM, m_valid=M)
        y, st = pl.pallas_call(
            kern,
            grid=(nm,),
            in_specs=in_specs,
            out_specs=(pl.BlockSpec((TM, CP), lambda i: (i, 0)),
                       pl.BlockSpec((1, 2, CP), lambda i: (i, 0, 0))),
            out_shape=(jax.ShapeDtypeStruct((M8, CP), jnp.bfloat16),
                       jax.ShapeDtypeStruct((nm, 2, CP), jnp.float32)),
            compiler_params=cparams,
        )(patches, w, bias)
        return y, st

    kern = functools.partial(_conv_kernel, relu=relu)
    y = pl.pallas_call(
        kern,
        grid=(nm,),
        in_specs=in_specs,
        out_specs=pl.BlockSpec((TM, CP), lambda i: (i, 0)),
        out_shape=jax.ShapeDtypeStruct((M8, CP), jnp.bfloat16),
        compiler_params=cparams,
    )(patches, w, bias)
    return y


def _bn_scale_shift(stats, M, gamma, beta, CP):
    """Training-mode BN: fold batch mean/var + gamma/beta into scale & shift."""
    s = jnp.sum(stats[:, 0, :], axis=0)
    s2 = jnp.sum(stats[:, 1, :], axis=0)
    mean = s / M
    # TODO(synk): E[x^2]-E[x]^2 in f32; switch to shifted sums if cancellation shows.
    var = jnp.maximum(s2 / M - mean * mean, 0.0)
    C = gamma.shape[0]
    gp = jnp.pad(gamma.astype(jnp.float32), (0, CP - C))
    bp = jnp.pad(beta.astype(jnp.float32), (0, CP - C))
    scale = gp * lax.rsqrt(var + 1e-5)
    shift = bp - mean * scale
    return scale.reshape(1, CP), shift.reshape(1, CP)


def _affine_pallas(y, scale, shift, residual, relu):
    """scale*y + shift (+residual) (+ReLU) over the (M8, CP) slab, viewed as
    (M8/8, 8*CP) so every store is 8x lane-wide; bf16 in/out, f32 math."""
    M8, CP = y.shape
    R = M8 // _WIDEN
    W = _WIDEN * CP
    yv = y.reshape(R, W)
    sv = jnp.tile(scale, (1, _WIDEN))
    tv = jnp.tile(shift, (1, _WIDEN))
    TA = R if R <= 1024 else 1024
    grid = (_cdiv(R, TA),)
    row = pl.BlockSpec((TA, W), lambda i: (i, 0))
    vec = pl.BlockSpec((1, W), lambda i: (0, 0))
    cparams = pltpu.CompilerParams(dimension_semantics=("parallel",))
    if residual is None:
        out = pl.pallas_call(
            functools.partial(_affine_kernel, relu=relu),
            grid=grid, in_specs=[row, vec, vec], out_specs=row,
            out_shape=jax.ShapeDtypeStruct((R, W), jnp.bfloat16),
            compiler_params=cparams,
        )(yv, sv, tv)
    else:
        rv = residual.reshape(R, W)
        out = pl.pallas_call(
            functools.partial(_affine_res_kernel, relu=relu),
            grid=grid, in_specs=[row, row, vec, vec], out_specs=row,
            out_shape=jax.ShapeDtypeStruct((R, W), jnp.bfloat16),
            compiler_params=cparams,
        )(yv, rv, sv, tv)
    return out.reshape(M8, CP)


# ----------------------------------------------------------------------------
# Cached jitted config functions (one compile per unique shape/config)
# ----------------------------------------------------------------------------

@functools.lru_cache(maxsize=None)
def _get_conv_fn(N, H, W, Cin, Cout, Kh, Kw, stride, padding, relu):
    def fn(x, w, b):
        patches, Ho, Wo = _im2col(x, Kh, Kw, stride, padding)
        M = patches.shape[0]
        y = _mm_pallas(patches, w, b, with_stats=False, relu=relu)
        return y[:M, :Cout].reshape(N, Ho, Wo, Cout)
    return jax.jit(fn)


@functools.lru_cache(maxsize=None)
def _get_conv_bn_fn(N, H, W, Cin, Cout, Kh, Kw, stride, padding, relu, has_res):
    def fn(x, w, b, gamma, beta, *res):
        patches, Ho, Wo = _im2col(x, Kh, Kw, stride, padding)
        M = patches.shape[0]
        y, st = _mm_pallas(patches, w, b, with_stats=True)
        M8, CP = y.shape
        scale, shift = _bn_scale_shift(st, M, gamma, beta, CP)
        residual = None
        if has_res:
            r = res[0].astype(jnp.bfloat16).reshape(M, Cout)
            if M8 != M or CP != Cout:
                r = jnp.pad(r, ((0, M8 - M), (0, CP - Cout)))
            residual = r
        out = _affine_pallas(y, scale, shift, residual, relu)
        return out[:M, :Cout].reshape(N, Ho, Wo, Cout)
    return jax.jit(fn)


@functools.lru_cache(maxsize=None)
def _get_conv_bn_pair_fn(N, H, W, Cin, CoutA, CoutB, Kh, Kw, stride, padding, relu):
    """Two conv+BN heads sharing one input: concatenated Cout (256-lane N tile
    for the 2x256^2 MXUs on v6e/v7x), one matmul+stats, one affine, then split."""
    def fn(x, wa, ba, ga, bea, wb, bb, gb, beb):
        w = jnp.concatenate([wa, wb], axis=1)
        bias = jnp.concatenate([ba, bb], axis=1)
        gamma = jnp.concatenate([ga, gb])
        beta = jnp.concatenate([bea, beb])
        patches, Ho, Wo = _im2col(x, Kh, Kw, stride, padding)
        M = patches.shape[0]
        y, st = _mm_pallas(patches, w, bias, with_stats=True)
        M8, CP = y.shape
        scale, shift = _bn_scale_shift(st, M, gamma, beta, CP)
        out = _affine_pallas(y, scale, shift, None, relu)
        out = out[:M].reshape(N, Ho, Wo, CP)
        return out[..., :CoutA], out[..., CoutA:CoutA + CoutB]
    return jax.jit(fn)


@functools.lru_cache(maxsize=None)
def _get_convT_fn(N, H, W, Cin, Cout, Kh, Kw, stride, padding, output_padding,
                  relu, has_bn):
    # TODO(synk): zero-insertion (not phase-split) transposed conv; only 4 call
    # sites on small tensors so the extra MXU work is negligible.
    def dilate(x):
        x = x.astype(jnp.bfloat16)
        Hd, Wd = (H - 1) * stride + 1, (W - 1) * stride + 1
        xd = jnp.zeros((N, Hd, Wd, Cin), x.dtype).at[:, ::stride, ::stride, :].set(x)
        ph, pw = Kh - 1 - padding, Kw - 1 - padding
        return jnp.pad(xd, ((0, 0), (ph, ph + output_padding),
                            (pw, pw + output_padding), (0, 0)))

    if has_bn:
        def fn(x, w, b, gamma, beta):
            xd = dilate(x)
            patches, Ho, Wo = _im2col(xd, Kh, Kw, 1, 0)
            M = patches.shape[0]
            y, st = _mm_pallas(patches, w, b, with_stats=True)
            scale, shift = _bn_scale_shift(st, M, gamma, beta, y.shape[1])
            out = _affine_pallas(y, scale, shift, None, relu)
            return out[:M, :Cout].reshape(N, Ho, Wo, Cout)
    else:
        def fn(x, w, b):
            xd = dilate(x)
            patches, Ho, Wo = _im2col(xd, Kh, Kw, 1, 0)
            M = patches.shape[0]
            y = _mm_pallas(patches, w, b, with_stats=False, relu=relu)
            return y[:M, :Cout].reshape(N, Ho, Wo, Cout)
    return jax.jit(fn)


# ----------------------------------------------------------------------------
# Op wrappers
# ----------------------------------------------------------------------------

def conv2d(x, p, stride=1, padding=0, relu=False):
    N, H, W, Cin = x.shape
    fn = _get_conv_fn(N, H, W, Cin, p['cout'], p['kh'], p['kw'],
                      stride, padding, relu)
    return fn(x, p['w'], p['b'])


def conv_bn(x, p, bn, stride=1, padding=0, relu=True, residual=None):
    N, H, W, Cin = x.shape
    fn = _get_conv_bn_fn(N, H, W, Cin, p['cout'], p['kh'], p['kw'],
                         stride, padding, relu, residual is not None)
    if residual is None:
        return fn(x, p['w'], p['b'], bn['gamma'], bn['beta'])
    return fn(x, p['w'], p['b'], bn['gamma'], bn['beta'], residual)


def conv_bn_pair(x, pa, bna, pb, bnb, stride=1, padding=0, relu=True):
    N, H, W, Cin = x.shape
    fn = _get_conv_bn_pair_fn(N, H, W, Cin, pa['cout'], pb['cout'],
                              pa['kh'], pa['kw'], stride, padding, relu)
    return fn(x, pa['w'], pa['b'], bna['gamma'], bna['beta'],
              pb['w'], pb['b'], bnb['gamma'], bnb['beta'])


def conv_transpose2d(x, p, stride, padding=0, output_padding=0,
                     relu=False, bn=None):
    N, H, W, Cin = x.shape
    fn = _get_convT_fn(N, H, W, Cin, p['cout'], p['kh'], p['kw'],
                       stride, padding, output_padding, relu, bn is not None)
    if bn is None:
        return fn(x, p['w'], p['b'])
    return fn(x, p['w'], p['b'], bn['gamma'], bn['beta'])


def maxpool2(x):  # 2x2, stride 2, ceil_mode=True
    N, H, W, C = x.shape
    Ho, Wo = -(-H // 2), -(-W // 2)
    xp = jnp.pad(x, ((0, 0), (0, Ho * 2 - H), (0, Wo * 2 - W), (0, 0)),
                 constant_values=-jnp.inf)
    return xp.reshape(N, Ho, 2, Wo, 2, C).max(axis=(2, 4))


def upsample_add(up1, low):
    """up1 + nearest-2x-upsample(low), fused so the 4x tensor is never
    materialized (XLA fuses the broadcast/reshape into the add)."""
    N, R2, C2, C = low.shape
    r, c = up1.shape[1], up1.shape[2]
    u = jnp.broadcast_to(low[:, :, None, :, None, :], (N, R2, 2, C2, 2, C))
    u = u.reshape(N, 2 * R2, 2 * C2, C)[:, :r, :c, :]
    return up1 + u


# ----------------------------------------------------------------------------
# Module forwards
# ----------------------------------------------------------------------------

def resnet_block_fwd(x, bp):
    out = conv_bn(x, bp['conv1'], bp['bn1'], padding=1, relu=True)
    residual = x
    if 'downsample' in bp:
        residual = conv2d(x, bp['downsample'])
    return conv_bn(out, bp['conv2'], bp['bn2'], padding=1, relu=True,
                   residual=residual)


def res_seq(x, seq):
    for bp in seq:
        x = resnet_block_fwd(x, bp)
    return x


def res_seq_pair(x, seq_a, seq_b):
    """Two residual sequences sharing the same input (hourglass depth-0 split):
    fuse the first conv1+BN of both branches into one 256-lane-Cout matmul."""
    ba, bb = seq_a[0], seq_b[0]
    ca, cb = ba['conv1'], bb['conv1']
    if (ca['cout'] % LANE == 0 and cb['cout'] % LANE == 0
            and 'downsample' not in ba and 'downsample' not in bb):
        oa, ob = conv_bn_pair(x, ca, ba['bn1'], cb, bb['bn1'],
                              padding=1, relu=True)
        a = conv_bn(oa, ba['conv2'], ba['bn2'], padding=1, relu=True, residual=x)
        b = conv_bn(ob, bb['conv2'], bb['bn2'], padding=1, relu=True, residual=x)
        return res_seq(a, seq_a[1:]), res_seq(b, seq_b[1:])
    return res_seq(x, seq_a), res_seq(x, seq_b)


def fc_fwd(x, fp):
    return conv_bn(x, fp['conv'], fp['bn'], relu=True)


def hourglass_fwd(n, x, levels):
    up1 = res_seq(x, levels[n - 1][0])
    low1 = maxpool2(x)
    low1 = res_seq(low1, levels[n - 1][1])
    if n > 1:
        low2_1, low2_2 = hourglass_fwd(n - 1, low1, levels)
    else:
        low2_1, low2_2 = res_seq_pair(low1, levels[0][4], levels[0][5])
    low3_1 = res_seq(low2_1, levels[n - 1][2])
    low3_2 = res_seq(low2_2, levels[n - 1][3])
    return upsample_add(up1, low3_1), upsample_add(up1, low3_2)


def decoder_fwd(x, dp):
    x = conv_bn(x, dp['conv1'], dp['norm1'], relu=True)
    x = conv_transpose2d(x, dp['deconv2'], stride=2, padding=1,
                         output_padding=1, relu=True, bn=dp['norm2'])
    x = conv_bn(x, dp['conv3'], dp['norm3'], relu=True)
    return x


def forward(params, x_nchw, num_stacks=2, depth=3):
    rows, cols = x_nchw.shape[2], x_nchw.shape[3]
    x = jnp.transpose(x_nchw, (0, 2, 3, 1)).astype(jnp.bfloat16)  # -> NHWC
    x = conv_bn(x, params['conv1'], params['bn1'], stride=2, padding=3, relu=True)
    x = res_seq(x, params['layer1'])
    x = maxpool2(x)
    x = res_seq(x, params['layer2'])
    x = res_seq(x, params['layer3'])

    out_1, out_2 = [], []
    r4, c4 = int(math.ceil(rows / 4.0)), int(math.ceil(cols / 4.0))
    y1 = y2 = None
    for i in range(num_stacks):
        y1, y2 = hourglass_fwd(depth, x, params['hg'][i])
        y1, y2 = res_seq(y1, params['res_1'][i]), res_seq(y2, params['res_2'][i])
        y1, y2 = fc_fwd(y1, params['fc_1'][i]), fc_fwd(y2, params['fc_2'][i])
        score1 = conv2d(y1, params['score_1'][i])
        score2 = conv2d(y2, params['score_2'][i])
        out_1.append(score1[:, :r4, :c4, :])
        out_2.append(score2[:, :r4, :c4, :])
        if i < num_stacks - 1:
            # Fused intermediate supervision: x + _fc_1 + _score_1 + _fc_2 + _score_2
            # becomes one lane-dense 1x1 matmul over channel-concatenated inputs.
            cat = jnp.concatenate([y1, score1, y2, score2], axis=-1)
            fw = jnp.concatenate(
                [params['_fc_1'][i]['w'], params['_score_1'][i]['w'],
                 params['_fc_2'][i]['w'], params['_score_2'][i]['w']], axis=0)
            fb = (params['_fc_1'][i]['b'] + params['_score_1'][i]['b']
                  + params['_fc_2'][i]['b'] + params['_score_2'][i]['b'])
            fused = {'w': fw, 'b': fb, 'kh': 1, 'kw': 1,
                     'cout': params['_fc_1'][i]['cout']}
            x = x + conv2d(cat, fused)

    r2, c2 = int(math.ceil(rows / 2.0)), int(math.ceil(cols / 2.0))

    # task-1 decoder head
    d1 = decoder_fwd(y1, params['decoder1'])[:, :r2, :c2, :]
    d1_score = conv2d(d1, params['decoder1_score'])
    out_1.append(d1_score)
    f2 = conv_transpose2d(d1, params['finaldeconv1'], stride=2, relu=True)
    # TODO(synk): `spin` (dgcn_seg_l41/l42) class is not defined in the reference source; applied as identity.
    f4 = conv2d(f2, params['finalconv2'], relu=True)
    f5 = conv2d(f4, params['finalconv3'], padding=1)
    out_1.append(f5)

    # task-2 (angle) decoder head
    a_d1 = decoder_fwd(y2, params['angle_decoder1'])[:, :r2, :c2, :]
    a_score = conv2d(a_d1, params['angle_decoder1_score'])
    out_2.append(a_score)
    a_f2 = conv_transpose2d(a_d1, params['angle_finaldeconv1'], stride=2, relu=True)
    a_f4 = conv2d(a_f2, params['angle_finalconv2'], relu=True)
    a_f5 = conv2d(a_f4, params['angle_finalconv3'], padding=1)
    out_2.append(a_f5)

    to_nchw = lambda t: jnp.transpose(t, (0, 3, 1, 2)).astype(jnp.float32)
    return [to_nchw(t) for t in out_1], [to_nchw(t) for t in out_2]


# ----------------------------------------------------------------------------
# Deterministic parameter construction (shapes mirror the PyTorch __init__).
# Conv weights are pre-transposed to (Kh*Kw*Cin, CP) bf16 matmul matrices with
# Cout pre-padded to a lane multiple; ConvTranspose weights are pre-flipped +
# transposed the same way.  Biases are pre-padded (1, CP) f32.
# ----------------------------------------------------------------------------

def build_params(key, task1_classes=2, task2_classes=37, in_channels=3,
                 num_stacks=2, num_blocks=1, hg_num_blocks=3, depth=3):
    keys = iter(jax.random.split(key, 2048))
    nk = lambda: next(keys)

    def _prep(w_ocihw, b, k, cin, cout):
        w2 = jnp.transpose(w_ocihw, (2, 3, 1, 0)).reshape(k * k * cin, cout)
        CP = _round_up(cout, LANE)
        w2 = jnp.pad(w2, ((0, 0), (0, CP - cout))).astype(jnp.bfloat16)
        b2 = jnp.pad(b.astype(jnp.float32), (0, CP - cout)).reshape(1, CP)
        return {'w': w2, 'b': b2, 'kh': k, 'kw': k, 'cin': cin, 'cout': cout}

    def conv_p(cin, cout, k, bias=True):
        w = 0.05 * jax.random.normal(nk(), (cout, cin, k, k), jnp.float32)
        b = (0.05 * jax.random.normal(nk(), (cout,), jnp.float32)
             if bias else jnp.zeros((cout,), jnp.float32))
        return _prep(w, b, k, cin, cout)

    def convT_p(cin, cout, k):
        w = 0.05 * jax.random.normal(nk(), (cin, cout, k, k), jnp.float32)
        b = 0.05 * jax.random.normal(nk(), (cout,), jnp.float32)
        wc = jnp.transpose(w[:, :, ::-1, ::-1], (1, 0, 2, 3))  # -> (Cout,Cin,k,k)
        return _prep(wc, b, k, cin, cout)

    def bn_p(c):
        return {'gamma': 1.0 + 0.1 * jax.random.normal(nk(), (c,), jnp.float32),
                'beta': 0.1 * jax.random.normal(nk(), (c,), jnp.float32)}

    def block_p(inplanes, planes, downsample=False):
        d = {'conv1': conv_p(inplanes, planes, 3, bias=False), 'bn1': bn_p(planes),
             'conv2': conv_p(planes, planes, 3, bias=False), 'bn2': bn_p(planes)}
        if downsample:
            d['downsample'] = conv_p(inplanes, planes, 1, bias=True)
        return d

    state = {'inplanes': 64}

    def make_residual(planes, blocks):
        layers = [block_p(state['inplanes'], planes, state['inplanes'] != planes)]
        state['inplanes'] = planes
        for _ in range(1, blocks):
            layers.append(block_p(planes, planes, False))
        return layers

    num_feats = 128
    p = {'conv1': conv_p(in_channels, 64, 7, bias=True), 'bn1': bn_p(64)}
    p['layer1'] = make_residual(64, 1)
    p['layer2'] = make_residual(64, num_blocks)
    p['layer3'] = make_residual(num_feats, num_blocks)
    ch = num_feats

    def residual1():
        return [block_p(num_feats, num_feats, False) for _ in range(hg_num_blocks)]

    def fc_p(c):
        return {'conv': conv_p(c, c, 1, bias=True), 'bn': bn_p(c)}

    hg, res_1, res_2, fc_1, fc_2 = [], [], [], [], []
    score_1, score_2, _fc_1, _fc_2, _sc_1, _sc_2 = [], [], [], [], [], []
    for i in range(num_stacks):
        levels = []
        for d in range(depth):
            seqs = [residual1() for _ in range(4)]
            if d == 0:
                seqs += [residual1(), residual1()]
            levels.append(seqs)
        hg.append(levels)
        res_1.append(make_residual(num_feats, hg_num_blocks))
        res_2.append(make_residual(num_feats, hg_num_blocks))
        fc_1.append(fc_p(ch))
        fc_2.append(fc_p(ch))
        score_1.append(conv_p(ch, task1_classes, 1))
        score_2.append(conv_p(ch, task2_classes, 1))
        if i < num_stacks - 1:
            _fc_1.append(conv_p(ch, ch, 1))
            _fc_2.append(conv_p(ch, ch, 1))
            _sc_1.append(conv_p(task1_classes, ch, 1))
            _sc_2.append(conv_p(task2_classes, ch, 1))
    p.update(hg=hg, res_1=res_1, res_2=res_2, fc_1=fc_1, fc_2=fc_2,
             score_1=score_1, score_2=score_2, _fc_1=_fc_1, _fc_2=_fc_2,
             _score_1=_sc_1, _score_2=_sc_2)

    # At this point the reference's self.inplanes == num_feats (128).
    inplanes_final = state['inplanes']

    def decoder_p(in_ch, n_filters):
        m = in_ch // 4
        return {'conv1': conv_p(in_ch, m, 1), 'norm1': bn_p(m),
                'deconv2': convT_p(m, m, 3), 'norm2': bn_p(m),
                'conv3': conv_p(m, n_filters, 1), 'norm3': bn_p(n_filters)}

    p['decoder1'] = decoder_p(num_feats, inplanes_final)
    p['decoder1_score'] = conv_p(inplanes_final, task1_classes, 1)
    p['finaldeconv1'] = convT_p(inplanes_final, 32, 3)
    p['finalconv2'] = conv_p(32, 32, 3)
    p['finalconv3'] = conv_p(32, task1_classes, 2)
    p['angle_decoder1'] = decoder_p(num_feats, inplanes_final)
    p['angle_decoder1_score'] = conv_p(inplanes_final, task2_classes, 1)
    p['angle_finaldeconv1'] = convT_p(inplanes_final, 32, 3)
    p['angle_finalconv2'] = conv_p(32, 32, 3)
    p['angle_finalconv3'] = conv_p(32, task2_classes, 2)
    return p


# ----------------------------------------------------------------------------

if __name__ == "__main__":
    key = jax.random.PRNGKey(0)
    pkey, xkey = jax.random.split(key)
    params = build_params(pkey)
    x = jax.random.normal(xkey, (2, 3, 16, 16), jnp.float32)  # NCHW input
    out_1, out_2 = forward(params, x)
    jax.block_until_ready((out_1, out_2))
    print("KERNEL_OK")
</pallas_src>

<mosaic_0001>
module attributes {stable_mosaic.version = 11 : i64} {
  func.func @_conv_stats_kernel(%arg0: i32, %arg1: memref<128x147xbf16, #tpu.memory_space<vmem>>, %arg2: memref<147x128xbf16, #tpu.memory_space<vmem>>, %arg3: memref<1x128xf32, #tpu.memory_space<vmem>>, %arg4: memref<128x128xbf16, #tpu.memory_space<vmem>>, %arg5: memref<1x2x128xf32, #tpu.memory_space<vmem>>) attributes {dimension_semantics = [#tpu.dimension_semantics<parallel>], iteration_bounds = array<i64: 1>, scalar_prefetch = 0 : i64, scratch_operands = 0 : i64, tpu.core_type = #tpu.core_type<tc>, window_params = [{transform_indices = @transform_0, window_bounds = array<i64: 128, 147>}, {pipeline_mode = #tpu.pipeline_mode<synchronous>, transform_indices = @transform_1, window_bounds = array<i64: 147, 128>}, {pipeline_mode = #tpu.pipeline_mode<synchronous>, transform_indices = @transform_2, window_bounds = array<i64: 1, 128>}, {transform_indices = @transform_3, window_bounds = array<i64: 128, 128>}, {transform_indices = @transform_4, window_bounds = array<i64: 1, 2, 128>}]} {
    %c0 = arith.constant 0 : index
    %c0_0 = arith.constant 0 : index
    %0 = vector.load %arg1[%c0, %c0_0] : memref<128x147xbf16, #tpu.memory_space<vmem>>, vector<128x147xbf16>
    %c0_1 = arith.constant 0 : index
    %c0_2 = arith.constant 0 : index
    %1 = vector.load %arg2[%c0_1, %c0_2] : memref<147x128xbf16, #tpu.memory_space<vmem>>, vector<147x128xbf16>
    %cst = arith.constant dense<0.000000e+00> : vector<128x128xf32>
    %2 = tpu.matmul %0, %1, %cst {dimension_numbers = #tpu.dot_dimension_numbers<[1], [0], [0], [1], [0, 0, 1, 1], [], []>} : vector<128x147xbf16>, vector<147x128xbf16>, vector<128x128xf32> -> vector<128x128xf32>
    %c0_3 = arith.constant 0 : index
    %c0_4 = arith.constant 0 : index
    %3 = vector.load %arg3[%c0_3, %c0_4] : memref<1x128xf32, #tpu.memory_space<vmem>>, vector<1x128xf32>
    %4 = vector.broadcast %3 : vector<1x128xf32> to vector<128x128xf32>
    %5 = arith.addf %2, %4 : vector<128x128xf32>
    %6 = arith.truncf %5 : vector<128x128xf32> to vector<128x128xbf16>
    %c0_5 = arith.constant 0 : index
    %c0_6 = arith.constant 0 : index
    %7 = vector.load %arg4[%c0_5, %c0_6] : memref<128x128xbf16, #tpu.memory_space<vmem>>, vector<128x128xbf16>
    tpu.vector_store %arg4[%c0_5, %c0_6], %6 {strides = array<i32>} : memref<128x128xbf16, #tpu.memory_space<vmem>>, vector<128x128xbf16>,
    %8 = tpu.iota {dimensions = array<i32: 0>} : vector<128x1xi32>
    %c128_i32 = arith.constant 128 : i32
    %9 = arith.muli %arg0, %c128_i32 : i32
    %10 = vector.broadcast %9 : i32 to vector<128x1xi32>
    %11 = arith.addi %8, %10 : vector<128x1xi32>
    %c128_i32_7 = arith.constant 128 : i32
    %12 = vector.broadcast %c128_i32_7 : i32 to vector<128x1xi32>
    %13 = arith.cmpi slt, %11, %12 : vector<128x1xi32>
    %cst_8 = arith.constant 0.000000e+00 : f32
    %14 = vector.shape_cast %13 : vector<128x1xi1> to vector<128x1xi1>
    %15 = vector.broadcast %14 : vector<128x1xi1> to vector<128x128xi1>
    %16 = vector.broadcast %cst_8 : f32 to vector<128x128xf32>
    %17 = arith.select %15, %5, %16 : vector<128x128xi1>, vector<128x128xf32>
    %cst_9 = arith.constant dense<0.000000e+00> : vector<128xf32>
    %18 = vector.multi_reduction <add>, %17, %cst_9 [0] : vector<128x128xf32> to vector<128xf32>
    %19 = vector.shape_cast %18 : vector<128xf32> to vector<1x128xf32>
    %c0_10 = arith.constant 0 : index
    %c0_11 = arith.constant 0 : index
    %c0_12 = arith.constant 0 : index
    %20 = vector.load %arg5[%c0_10, %c0_11, %c0_12] : memref<1x2x128xf32, #tpu.memory_space<vmem>>, vector<1x1x128xf32>
    %21 = vector.shape_cast %20 : vector<1x1x128xf32> to vector<1x128xf32>
    %22 = vector.shape_cast %19 : vector<1x128xf32> to vector<1x1x128xf32>
    tpu.vector_store %arg5[%c0_10, %c0_11, %c0_12], %22 {strides = array<i32>} : memref<1x2x128xf32, #tpu.memory_space<vmem>>, vector<1x1x128xf32>,
    %23 = arith.mulf %17, %17 : vector<128x128xf32>
    %cst_13 = arith.constant dense<0.000000e+00> : vector<128xf32>
    %24 = vector.multi_reduction <add>, %23, %cst_13 [0] : vector<128x128xf32> to vector<128xf32>
    %25 = vector.shape_cast %24 : vector<128xf32> to vector<1x128xf32>
    %c0_14 = arith.constant 0 : index
    %c1 = arith.constant 1 : index
    %c0_15 = arith.constant 0 : index
    %26 = vector.load %arg5[%c0_14, %c1, %c0_15] : memref<1x2x128xf32, #tpu.memory_space<vmem>>, vector<1x1x128xf32>
    %27 = vector.shape_cast %26 : vector<1x1x128xf32> to vector<1x128xf32>
    %28 = vector.shape_cast %25 : vector<1x128xf32> to vector<1x1x128xf32>
    tpu.vector_store %arg5[%c0_14, %c1, %c0_15], %28 {strides = array<i32>} : memref<1x2x128xf32, #tpu.memory_space<vmem>>, vector<1x1x128xf32>,
    return
  }
  func.func @transform_0(%arg0: i32) -> (i32, i32) {
    %c0_i32 = arith.constant 0 : i32
    %c0_i32_0 = arith.constant 0 : i32
    return %arg0, %c0_i32 : i32, i32
  }
  func.func @transform_1(%arg0: i32) -> (i32, i32) {
    %c0_i32 = arith.constant 0 : i32
    %c0_i32_0 = arith.constant 0 : i32
    %c0_i32_1 = arith.constant 0 : i32
    return %c0_i32, %c0_i32_0 : i32, i32
  }
  func.func @transform_2(%arg0: i32) -> (i32, i32) {
    %c0_i32 = arith.constant 0 : i32
    %c0_i32_0 = arith.constant 0 : i32
    %c0_i32_1 = arith.constant 0 : i32
    return %c0_i32, %c0_i32_0 : i32, i32
  }
  func.func @transform_3(%arg0: i32) -> (i32, i32) {
    %c0_i32 = arith.constant 0 : i32
    %c0_i32_0 = arith.constant 0 : i32
    return %arg0, %c0_i32 : i32, i32
  }
  func.func @transform_4(%arg0: i32) -> (i32, i32, i32) {
    %c0_i32 = arith.constant 0 : i32
    %c0_i32_0 = arith.constant 0 : i32
    %c0_i32_1 = arith.constant 0 : i32
    return %arg0, %c0_i32, %c0_i32_0 : i32, i32, i32
  }
}

module attributes {stable_mosaic.version = 11 : i64} {
  func.func @_affine_kernel(%arg0: i32, %arg1: memref<16x1024xbf16, #tpu.memory_space<vmem>>, %arg2: memref<1x1024xf32, #tpu.memory_space<vmem>>, %arg3: memref<1x1024xf32, #tpu.memory_space<vmem>>, %arg4: memref<16x1024xbf16, #tpu.memory_space<vmem>>) attributes {dimension_semantics = [#tpu.dimension_semantics<parallel>], iteration_bounds = array<i64: 1>, scalar_prefetch = 0 : i64, scratch_operands = 0 : i64, tpu.core_type = #tpu.core_type<tc>, window_params = [{transform_indices = @transform_0, window_bounds = array<i64: 16, 1024>}, {pipeline_mode = #tpu.pipeline_mode<synchronous>, transform_indices = @transform_1, window_bounds = array<i64: 1, 1024>}, {pipeline_mode = #tpu.pipeline_mode<synchronous>, transform_indices = @transform_2, window_bounds = array<i64: 1, 1024>}, {transform_indices = @transform_3, window_bounds = array<i64: 16, 1024>}]} {
    %c0 = arith.constant 0 : index
    %c0_0 = arith.constant 0 : index
    %0 = vector.load %arg1[%c0, %c0_0] : memref<16x1024xbf16, #tpu.memory_space<vmem>>, vector<16x1024xbf16>
    %1 = arith.extf %0 : vector<16x1024xbf16> to vector<16x1024xf32>
    %c0_1 = arith.constant 0 : index
    %c0_2 = arith.constant 0 : index
    %2 = vector.load %arg2[%c0_1, %c0_2] : memref<1x1024xf32, #tpu.memory_space<vmem>>, vector<1x1024xf32>
    %3 = vector.broadcast %2 : vector<1x1024xf32> to vector<16x1024xf32>
    %4 = arith.mulf %1, %3 : vector<16x1024xf32>
    %c0_3 = arith.constant 0 : index
    %c0_4 = arith.constant 0 : index
    %5 = vector.load %arg3[%c0_3, %c0_4] : memref<1x1024xf32, #tpu.memory_space<vmem>>, vector<1x1024xf32>
    %6 = vector.broadcast %5 : vector<1x1024xf32> to vector<16x1024xf32>
    %7 = arith.addf %4, %6 : vector<16x1024xf32>
    %cst = arith.constant 0.000000e+00 : f32
    %8 = vector.broadcast %cst : f32 to vector<16x1024xf32>
    %9 = arith.maximumf %7, %8 : vector<16x1024xf32>
    %10 = arith.truncf %9 : vector<16x1024xf32> to vector<16x1024xbf16>
    %c0_5 = arith.constant 0 : index
    %c0_6 = arith.constant 0 : index
    %11 = vector.load %arg4[%c0_5, %c0_6] : memref<16x1024xbf16, #tpu.memory_space<vmem>>, vector<16x1024xbf16>
    tpu.vector_store %arg4[%c0_5, %c0_6], %10 {strides = array<i32>} : memref<16x1024xbf16, #tpu.memory_space<vmem>>, vector<16x1024xbf16>,
    return
  }
  func.func @transform_0(%arg0: i32) -> (i32, i32) {
    %c0_i32 = arith.constant 0 : i32
    %c0_i32_0 = arith.constant 0 : i32
    return %arg0, %c0_i32 : i32, i32
  }
  func.func @transform_1(%arg0: i32) -> (i32, i32) {
    %c0_i32 = arith.constant 0 : i32
    %c0_i32_0 = arith.constant 0 : i32
    %c0_i32_1 = arith.constant 0 : i32
    return %c0_i32, %c0_i32_0 : i32, i32
  }
  func.func @transform_2(%arg0: i32) -> (i32, i32) {
    %c0_i32 = arith.constant 0 : i32
    %c0_i32_0 = arith.constant 0 : i32
    %c0_i32_1 = arith.constant 0 : i32
    return %c0_i32, %c0_i32_0 : i32, i32
  }
  func.func @transform_3(%arg0: i32) -> (i32, i32) {
    %c0_i32 = arith.constant 0 : i32
    %c0_i32_0 = arith.constant 0 : i32
    return %arg0, %c0_i32 : i32, i32
  }
}

</mosaic_0001>

<bundles_post_ra>
// kernel: fn.3
= control target key start
LH: loop header
LB: loop body
LE: loop exit
PB: predicated region body
PF: predicated region fallthrough
CT: control target
= control target key end

     0   :  { %v40_v0 = vlaneseq  ;;  %s320_s0 = inlined_call_operand.vmem [shape: bf16[16,1024], index: 0, kind: input, shape index: {}]   ;;  %s321_s1 = inlined_call_operand.vmem [shape: f32[1,1024], index: 1, kind: input, shape index: {}]   ;;  %s322_s2 = inlined_call_operand.vmem [shape: f32[1,1024], index: 2, kind: input, shape index: {}]   ;;  %s323_s3 = inlined_call_operand.vmem [shape: bf16[16,1024], index: 3, kind: output, shape index: {}]  }
   0x1   :  { %v14_v1 = vld [vmem:[%s320_s0] sm:$0xff]  ;;  %v15_v5 = vld [vmem:[%s320_s0 + $0x8] sm:$0xff]  ;;  %v16_v6 = vld [vmem:[%s320_s0 + $0x10] sm:$0xff] }
   0x2   :  { %v22_v2 = vunpack.c.l.bf16 %v14_v1  ;;  %v23_v3 = vunpack.c.h.bf16 %v14_v1  ;;  %v41_v4 = vshrl.u32 %v40_v0, 7  ;;  %v17_v7 = vld [vmem:[%s320_s0 + $0x18] sm:$0xff]  ;;  %v38_v8 = vld [vmem:[%s321_s1] sm:$0xff]  ;;  %v24_v10 = vunpack.c.l.bf16 %v15_v5  ;;  %v19_v55 = vld [vmem:[%s320_s0 + $0x28] sm:$0xff] }
   0x3   :  { %v96_v9 = vld [vmem:[%s322_s2] sm:$0xff]  ;;  %v25_v11 = vunpack.c.h.bf16 %v15_v5  ;;  %v26_v12 = vunpack.c.l.bf16 %v16_v6  ;;  %v27_v13 = vunpack.c.h.bf16 %v16_v6  ;;  %v28_v20 = vunpack.c.l.bf16 %v17_v7  ;;  %v20_v60 = vld [vmem:[%s320_s0 + $0x30] sm:$0xff] }
   0x4   :  { %v42_v14 = vsub.s32 0, %v41_v4  ;;  %v46_v15 = vsub.s32 1, %v41_v4  ;;  %v50_v16 = vsub.s32 2, %v41_v4  ;;  %v54_v17 = vsub.s32 3, %v41_v4  ;;  %v18_v54 = vld [vmem:[%s320_s0 + $0x20] sm:$0xff] }
   0x5   :  { %v58_v18 = vsub.s32 4, %v41_v4  ;;  %v62_v19 = vsub.s32 5, %v41_v4  ;;  %v29_v21 = vunpack.c.h.bf16 %v17_v7  ;;  %v66_v44 = vsub.s32 6, %v41_v4 }
   0x6   :  { %v43_v22 = vrot.slane %v38_v8, %v42_v14  ;;  %v47_v23 = vrot.slane %v38_v8, %v46_v15  ;;  %v101_v24 = vrot.slane %v96_v9, %v42_v14  ;;  %v105_v25 = vrot.slane %v96_v9, %v46_v15 }
   0x7   :  { %v51_v26 = vrot.slane %v38_v8, %v50_v16  ;;  %v55_v27 = vrot.slane %v38_v8, %v54_v17  ;;  %v109_v28 = vrot.slane %v96_v9, %v50_v16  ;;  %v113_v29 = vrot.slane %v96_v9, %v54_v17 }
   0x8   :  { %v80_v30 = vmul.f32 %v43_v22, %v22_v2  ;;  %v81_v31 = vmul.f32 %v47_v23, %v23_v3  ;;  %v59_v32 = vrot.slane %v38_v8, %v58_v18  ;;  %v63_v33 = vrot.slane %v38_v8, %v62_v19 }
   0x9   :  { %v82_v34 = vmul.f32 %v51_v26, %v24_v10  ;;  %v83_v35 = vmul.f32 %v55_v27, %v25_v11  ;;  %v117_v36 = vrot.slane %v96_v9, %v58_v18  ;;  %v121_v37 = vrot.slane %v96_v9, %v62_v19 }
   0xa   :  { %v138_v38 = vadd.f32 %v101_v24, %v80_v30  ;;  %v139_v39 = vadd.f32 %v105_v25, %v81_v31  ;;  %v84_v40 = vmul.f32 %v59_v32, %v26_v12  ;;  %v85_v41 = vmul.f32 %v63_v33, %v27_v13  ;;  %v21_v13 = vld [vmem:[%s320_s0 + $0x38] sm:$0xff] }
   0xb   :  { %v140_v42 = vadd.f32 %v109_v28, %v82_v34  ;;  %v141_v43 = vadd.f32 %v113_v29, %v83_v35  ;;  %v70_v45 = vsub.s32 7, %v41_v4  ;;  %v67_v52 = vrot.slane %v38_v8, %v66_v44 }
   0xc   :  { %v154_v46 = vmax.f32 %v138_v38, 0.0  ;;  %v155_v47 = vmax.f32 %v139_v39, 0.0  ;;  %v142_v48 = vadd.f32 %v117_v36, %v84_v40  ;;  %v143_v49 = vadd.f32 %v121_v37, %v85_v41 }
   0xd   :  { %v156_v50 = vmax.f32 %v140_v42, 0.0  ;;  %v157_v51 = vmax.f32 %v141_v43, 0.0  ;;  %v71_v53 = vrot.slane %v38_v8, %v70_v45  ;;  %v125_v59 = vrot.slane %v96_v9, %v66_v44 }
   0xe   :  { %v238_v56 = vpack.c.bf16 %v155_v47, %v154_v46  ;;  %v158_v57 = vmax.f32 %v142_v48, 0.0  ;;  %v159_v58 = vmax.f32 %v143_v49, 0.0  ;;  %v86_v62 = vmul.f32 %v67_v52, %v28_v20 }
   0xf   :  { %v239_v61 = vpack.c.bf16 %v157_v51, %v156_v50  ;;  %v87_v63 = vmul.f32 %v71_v53, %v29_v21  ;;  %v129_v0 = vrot.slane %v96_v9, %v70_v45  ;;  %v30_v2 = vunpack.c.l.bf16 %v18_v54 }
  0x10   :  { %218 = vst [vmem:[%s323_s3] sm:$0xff] %v238_v56  ;;  %v240_v1 = vpack.c.bf16 %v159_v58, %v158_v57  ;;  %v31_v3 = vunpack.c.h.bf16 %v18_v54  ;;  %v32_v4 = vunpack.c.l.bf16 %v19_v55  ;;  %v144_v5 = vadd.f32 %v125_v59, %v86_v62 }
  0x11   :  { %219 = vst [vmem:[%s323_s3 + $0x8] sm:$0xff] %v239_v61  ;;  %v145_v6 = vadd.f32 %v129_v0, %v87_v63  ;;  %v33_v7 = vunpack.c.h.bf16 %v19_v55  ;;  %v34_v8 = vunpack.c.l.bf16 %v20_v60  ;;  %v88_v9 = vmul.f32 %v43_v22, %v30_v2 }
  0x12   :  { %220 = vst [vmem:[%s323_s3 + $0x10] sm:$0xff] %v240_v1  ;;  %v89_v10 = vmul.f32 %v47_v23, %v31_v3  ;;  %v90_v11 = vmul.f32 %v51_v26, %v32_v4  ;;  %v35_v12 = vunpack.c.h.bf16 %v20_v60  ;;  %v160_v14 = vmax.f32 %v144_v5, 0.0 }
  0x13   :  { %v161_v15 = vmax.f32 %v145_v6, 0.0  ;;  %v91_v16 = vmul.f32 %v55_v27, %v33_v7  ;;  %v92_v17 = vmul.f32 %v59_v32, %v34_v8  ;;  %v146_v18 = vadd.f32 %v101_v24, %v88_v9 }
  0x14   :  { %v147_v19 = vadd.f32 %v105_v25, %v89_v10  ;;  %v148_v20 = vadd.f32 %v109_v28, %v90_v11  ;;  %v93_v21 = vmul.f32 %v63_v33, %v35_v12  ;;  %v36_v35 = vunpack.c.l.bf16 %v21_v13 }
  0x15   :  { %v241_v30 = vpack.c.bf16 %v161_v15, %v160_v14  ;;  %v149_v31 = vadd.f32 %v113_v29, %v91_v16  ;;  %v150_v34 = vadd.f32 %v117_v36, %v92_v17  ;;  %v162_v22 = vmax.f32 %v146_v18, 0.0 }
  0x16   :  { %v163_v23 = vmax.f32 %v147_v19, 0.0  ;;  %v164_v26 = vmax.f32 %v148_v20, 0.0  ;;  %v151_v38 = vadd.f32 %v121_v37, %v93_v21  ;;  %v37_v27 = vunpack.c.h.bf16 %v21_v13 }
  0x17   :  { %221 = vst [vmem:[%s323_s3 + $0x18] sm:$0xff] %v241_v30  ;;  %v165_v39 = vmax.f32 %v149_v31, 0.0  ;;  %v166_v40 = vmax.f32 %v150_v34, 0.0  ;;  %v94_v32 = vmul.f32 %v67_v52, %v36_v35 }
  0x18   :  { %v242_v24 = vpack.c.bf16 %v163_v23, %v162_v22  ;;  %v167_v25 = vmax.f32 %v151_v38, 0.0  ;;  %v95_v33 = vmul.f32 %v71_v53, %v37_v27 }
  0x19   :  { %v243_v28 = vpack.c.bf16 %v165_v39, %v164_v26  ;;  %v152_v41 = vadd.f32 %v125_v59, %v94_v32 }
  0x1a   :  { %222 = vst [vmem:[%s323_s3 + $0x20] sm:$0xff] %v242_v24  ;;  %v244_v29 = vpack.c.bf16 %v167_v25, %v166_v40  ;;  %v153_v36 = vadd.f32 %v129_v0, %v95_v33 }
  0x1b   :  { %223 = vst [vmem:[%s323_s3 + $0x28] sm:$0xff] %v243_v28  ;;  %v168_v37 = vmax.f32 %v152_v41, 0.0 }
  0x1c   :  { %224 = vst [vmem:[%s323_s3 + $0x30] sm:$0xff] %v244_v29  ;;  %v169_v42 = vmax.f32 %v153_v36, 0.0 }
  0x1e   :  { %v245_v43 = vpack.c.bf16 %v169_v42, %v168_v37 }
  0x20   :  { %225 = vst [vmem:[%s323_s3 + $0x38] sm:$0xff] %v245_v43 }

// kernel: fn.2
= control target key start
LH: loop header
LB: loop body
LE: loop exit
PB: predicated region body
PF: predicated region fallthrough
CT: control target
= control target key end

     0   :  { %v734_v0 = vmov 0   ;;  %vm188_vm0 = vcmask 154624   ;;  %vm213_vm1 = vcmask 1040384   ;;  %vm214_vm2 = vcmask 1041408   ;;  %s916_s1 = inlined_call_operand.vmem [shape: bf16[147,128], index: 1, kind: input, shape index: {}]   ;;  %s917_s0 = inlined_call_operand.vmem [shape: bf16[128,147], index: 0, kind: input, shape index: {}]   ;;  %s918_s2 = inlined_call_operand.vmem [shape: f32[1,128], index: 2, kind: input, shape index: {}]   ;;  %s919_s3 = inlined_call_operand.vmem [shape: bf16[128,128], index: 3, kind: output, shape index: {0}]   ;;  %s920_s4 = inlined_call_operand.vmem [shape: f32[1,2,128], index: 4, kind: output, shape index: {1}]  }
   0x1   :  { %220 = vmatprep.subr.bf16.mxu0 %v734_v0  ;;  %v700_v1 = vld [vmem:[%s916_s1] sm:$0xff]   ;;  %678 = vmatprep.subr.bf16.mxu1 %v734_v0  ;;  %v701_v2 = vld [vmem:[%s916_s1 + $0x8] sm:$0xff]   ;;  %v702_v3 = vld [vmem:[%s916_s1 + $0x10] sm:$0xff]   ;;  %v735_v11 = vmov 65535  }
   0x2   :  { %221 = vmatpush1.bf16.msra.mxu0 %v700_v1  ;;  %688 = vmatpush1.bf16.msra.mxu1 %v700_v1  ;;  %v703_v4 = vld [vmem:[%s916_s1 + $0x18] sm:$0xff]   ;;  %v712_v5 = vld [vmem:[%s917_s0 + $0x4] ss:$8 sps:$4 sm:$0xff]   ;;  %v706_v9 = vld [vmem:[%s916_s1 + $0x30] sm:$0xff]   ;;  %v215_v12 = vsel %vm213_vm1, 4294967295, %v735_v11 }
   0x3   :  { %222 = vmatprep.subr.bf16.mxu0 %v734_v0  ;;  %679 = vmatprep.subr.bf16.mxu1 %v734_v0  ;;  %v718_v6 = vld [vmem:[%s917_s0 + $0x44] ss:$8 sps:$4 sm:$0xff]   ;;  %v707_v10 = vld [vmem:[%s916_s1 + $0x38] sm:$0xff]   ;;  %v709_v14 = vld [vmem:[%s916_s1 + $0x48] ss:$0 sps:$4 sm:$0x33]  }
   0x4   :  { %591 = vmatprep.mubr.msk.bf16.mxu0 %vm188_vm0, %v712_v5  ;;  %v704_v7 = vld [vmem:[%s916_s1 + $0x20] sm:$0xff]   ;;  %595 = vmatprep.mubr.msk.bf16.mxu1 %vm188_vm0, %v718_v6  ;;  %v705_v8 = vld [vmem:[%s916_s1 + $0x28] sm:$0xff]   ;;  %v216_v15 = vsel %vm214_vm2, %v215_v12, 0  ;;  %v713_v19 = vld [vmem:[%s917_s0 + $0x14] ss:$8 sps:$4 sm:$0xff]  }
   0x5   :  { %v708_v13 = vld [vmem:[%s916_s1 + $0x40] sm:$0xff]   ;;  %v218_v16 = vand.u32 %v709_v14, %v216_v15  ;;  %v722_v20 = vld [vmem:[%s917_s0 + $0x54] ss:$8 sps:$4 sm:$0xff]   ;;  %v715_v21 = vld [vmem:[%s917_s0 + $0x10] ss:$8 sps:$4 sm:$0xff]  }
   0x6   :  { %223 = vmatpush1.bf16.msra.mxu0 %v701_v2  ;;  %689 = vmatpush1.bf16.msra.mxu1 %v701_v2  ;;  %v710_v17 = vld [vmem:[%s917_s0] ss:$8 sps:$4 sm:$0xff]   ;;  %v724_v22 = vld [vmem:[%s917_s0 + $0x50] ss:$8 sps:$4 sm:$0xff]   ;;  %v719_v23 = vld [vmem:[%s917_s0 + $0x24] ss:$8 sps:$4 sm:$0xff]  }
   0x7   :  { %224 = vmatprep.subr.bf16.mxu0 %v734_v0  ;;  %680 = vmatprep.subr.bf16.mxu1 %v734_v0  ;;  %v716_v18 = vld [vmem:[%s917_s0 + $0x40] ss:$8 sps:$4 sm:$0xff]   ;;  %v728_v24 = vld [vmem:[%s917_s0 + $0x64] ss:$8 sps:$4 sm:$0xff]   ;;  %v725_v27 = vld [vmem:[%s917_s0 + $0x34] ss:$8 sps:$4 sm:$0xff]  }
   0x8   :  { %v721_v25 = vld [vmem:[%s917_s0 + $0x20] ss:$8 sps:$4 sm:$0xff]   ;;  %v731_v28 = vld [vmem:[%s917_s0 + $0x74] ss:$8 sps:$4 sm:$0xff]   ;;  %v727_v29 = vld [vmem:[%s917_s0 + $0x30] ss:$8 sps:$4 sm:$0xff]  }
   0x9   :  { %v730_v26 = vld [vmem:[%s917_s0 + $0x60] ss:$8 sps:$4 sm:$0xff]   ;;  %v733_v30 = vld [vmem:[%s917_s0 + $0x70] ss:$8 sps:$4 sm:$0xff]  }
   0xa   :  { %225 = vmatpush1.bf16.msra.mxu0 %v702_v3  ;;  %690 = vmatpush1.bf16.msra.mxu1 %v702_v3  ;;  %v850_v31 = vld [vmem:[%s918_s2] ss:$0 sm:$0xff] }
   0xb   :  { %226 = vmatprep.subr.bf16.mxu0 %v734_v0  ;;  %681 = vmatprep.subr.bf16.mxu1 %v734_v0 }
   0xe   :  { %227 = vmatpush1.bf16.msra.mxu0 %v703_v4  ;;  %691 = vmatpush1.bf16.msra.mxu1 %v703_v4 }
   0xf   :  { %228 = vmatprep.subr.bf16.mxu0 %v734_v0  ;;  %682 = vmatprep.subr.bf16.mxu1 %v734_v0 }
  0x12   :  { %229 = vmatpush1.bf16.msra.mxu0 %v704_v7  ;;  %692 = vmatpush1.bf16.msra.mxu1 %v704_v7 }
  0x13   :  { %230 = vmatprep.subr.bf16.mxu0 %v734_v0  ;;  %683 = vmatprep.subr.bf16.mxu1 %v734_v0 }
  0x16   :  { %231 = vmatpush1.bf16.msra.mxu0 %v705_v8  ;;  %693 = vmatpush1.bf16.msra.mxu1 %v705_v8 }
  0x17   :  { %232 = vmatprep.subr.bf16.mxu0 %v734_v0  ;;  %684 = vmatprep.subr.bf16.mxu1 %v734_v0 }
  0x1a   :  { %233 = vmatpush1.bf16.msra.mxu0 %v706_v9  ;;  %694 = vmatpush1.bf16.msra.mxu1 %v706_v9 }
  0x1b   :  { %234 = vmatprep.subr.bf16.mxu0 %v734_v0  ;;  %685 = vmatprep.subr.bf16.mxu1 %v734_v0 }
  0x1e   :  { %235 = vmatpush1.bf16.msra.mxu0 %v707_v10  ;;  %695 = vmatpush1.bf16.msra.mxu1 %v707_v10 }
  0x1f   :  { %236 = vmatprep.subr.bf16.mxu0 %v734_v0  ;;  %686 = vmatprep.subr.bf16.mxu1 %v734_v0 }
  0x22   :  { %237 = vmatpush1.bf16.msra.mxu0 %v708_v13  ;;  %696 = vmatpush1.bf16.msra.mxu1 %v708_v13 }
  0x23   :  { %238 = vmatprep.subr.bf16.mxu0 %v734_v0  ;;  %687 = vmatprep.subr.bf16.mxu1 %v734_v0 }
  0x26   :  { %239 = vmatpush1.bf16.msra.mxu0 %v218_v16  ;;  %697 = vmatpush1.bf16.msra.mxu1 %v218_v16 }
  0x29   :  { %253 = vmatmul.mubr.bf16.vlgmr.msra.gmra.mrb[0].mxu0 %v710_v17  ;;  %285 = vmatmul.mubr.bf16.vlgmr.msra.gmra.mrb[0].mxu1 %v716_v18 }
  0x2a   :  { %592 = vmatprep.mubr.msk.bf16.mxu0 %vm188_vm0, %v713_v19  ;;  %596 = vmatprep.mubr.msk.bf16.mxu1 %vm188_vm0, %v722_v20 }
  0x31   :  { %261 = vmatmul.mubr.bf16.gmra.mrb[4].mxu0 %v715_v21  ;;  %293 = vmatmul.mubr.bf16.gmra.mrb[4].mxu1 %v724_v22 }
  0x32   :  { %593 = vmatprep.mubr.msk.bf16.mxu0 %vm188_vm0, %v719_v23  ;;  %597 = vmatprep.mubr.msk.bf16.mxu1 %vm188_vm0, %v728_v24 }
  0x39   :  { %269 = vmatmul.mubr.bf16.gmra.mrb[8].mxu0 %v721_v25  ;;  %301 = vmatmul.mubr.bf16.gmra.mrb[8].mxu1 %v730_v26 }
  0x3a   :  { %594 = vmatprep.mubr.msk.bf16.mxu0 %vm188_vm0, %v725_v27  ;;  %598 = vmatprep.mubr.msk.bf16.mxu1 %vm188_vm0, %v731_v28 }
  0x41   :  { %277 = vmatmul.mubr.bf16.gmra.mrb[12].mxu0 %v727_v29  ;;  %309 = vmatmul.mubr.bf16.gmra.mrb[12].mxu1 %v733_v30 }
  0xfc   :  { %v254_v32 = vpop.f32.mrb[0].mxu0  ;;  %v286_v33 = vpop.f32.mrb[0].mxu1 }
  0xfd   :  { %v255_v34 = vadd.f32 %v850_v31, %v254_v32  ;;  %v256_v35 = vpop.f32.mrb[1].mxu0  ;;  %v854_v36 = vadd.f32 %v850_v31, %v286_v33  ;;  %v288_v37 = vpop.f32.mrb[1].mxu1 }
  0xfe   :  { %v257_v38 = vpop.f32.mrb[2].mxu0  ;;  %v289_v39 = vpop.f32.mrb[2].mxu1 }
  0xff   :  { %v258_v40 = vadd.f32 %v850_v31, %v257_v38  ;;  %v259_v41 = vpop.f32.mrb[3].mxu0  ;;  %v858_v42 = vadd.f32 %v850_v31, %v289_v39  ;;  %v291_v43 = vpop.f32.mrb[3].mxu1  ;;  %v518_v44 = vmul.f32 %v255_v34, %v255_v34 }
 0x101   :  { %v634_v45 = vpack.c.bf16 %v258_v40, %v255_v34  ;;  %v496_v46 = vadd.f32 %v258_v40, %v255_v34  ;;  %v519_v47 = vmul.f32 %v258_v40, %v258_v40  ;;  %v654_v48 = vpack.c.bf16 %v858_v42, %v854_v36 }
 0x103   :  { %635 = vst [vmem:[%s919_s3] sm:$0xff] %v634_v45   ;;  %v534_v49 = vadd.f32 %v519_v47, %v518_v44  ;;  %674 = vst [vmem:[%s919_s3 + $0x20] sm:$0xff] %v654_v48   ;;  %v526_v48 = vmul.f32 %v854_v36, %v854_v36 }
 0x104   :  { %v262_v50 = vpop.f32.mrb[4].mxu0  ;;  %v294_v51 = vpop.f32.mrb[4].mxu1 }
 0x105   :  { %v263_v52 = vadd.f32 %v850_v31, %v262_v50  ;;  %v264_v53 = vpop.f32.mrb[5].mxu0  ;;  %v296_v54 = vpop.f32.mrb[5].mxu1  ;;  %v870_v56 = vadd.f32 %v850_v31, %v294_v51 }
 0x106   :  { %v265_v55 = vpop.f32.mrb[6].mxu0  ;;  %v297_v57 = vpop.f32.mrb[6].mxu1 }
 0x107   :  { %v497_v58 = vadd.f32 %v496_v46, %v263_v52  ;;  %v520_v59 = vmul.f32 %v263_v52, %v263_v52  ;;  %v266_v60 = vadd.f32 %v850_v31, %v265_v55  ;;  %v267_v61 = vpop.f32.mrb[7].mxu0  ;;  %v299_v62 = vpop.f32.mrb[7].mxu1  ;;  %v298_v63 = vadd.f32 %v850_v31, %v297_v57 }
 0x108   :  { %v528_v53 = vmul.f32 %v870_v56, %v870_v56 }
 0x109   :  { %v535_v0 = vadd.f32 %v534_v49, %v520_v59  ;;  %v639_v1 = vpack.c.bf16 %v266_v60, %v263_v52  ;;  %v498_v2 = vadd.f32 %v497_v58, %v266_v60  ;;  %v521_v3 = vmul.f32 %v266_v60, %v266_v60 }
 0x10a   :  { %v659_v4 = vpack.c.bf16 %v298_v63, %v870_v56  ;;  %v529_v57 = vmul.f32 %v298_v63, %v298_v63 }
 0x10b   :  { %671 = vst [vmem:[%s919_s3 + $0x8] sm:$0xff] %v639_v1   ;;  %v536_v5 = vadd.f32 %v535_v0, %v521_v3 }
 0x10c   :  { %v270_v6 = vpop.f32.mrb[8].mxu0  ;;  %675 = vst [vmem:[%s919_s3 + $0x28] sm:$0xff] %v659_v4   ;;  %v302_v7 = vpop.f32.mrb[8].mxu1 }
 0x10d   :  { %v271_v8 = vadd.f32 %v850_v31, %v270_v6  ;;  %v272_v9 = vpop.f32.mrb[9].mxu0  ;;  %v304_v10 = vpop.f32.mrb[9].mxu1  ;;  %v303_v12 = vadd.f32 %v850_v31, %v302_v7 }
 0x10e   :  { %v273_v11 = vpop.f32.mrb[10].mxu0  ;;  %v305_v13 = vpop.f32.mrb[10].mxu1 }
 0x10f   :  { %v499_v14 = vadd.f32 %v498_v2, %v271_v8  ;;  %v522_v15 = vmul.f32 %v271_v8, %v271_v8  ;;  %v274_v16 = vadd.f32 %v850_v31, %v273_v11  ;;  %v275_v17 = vpop.f32.mrb[11].mxu0  ;;  %v307_v18 = vpop.f32.mrb[11].mxu1  ;;  %v306_v19 = vadd.f32 %v850_v31, %v305_v13 }
 0x110   :  { %v530_v60 = vmul.f32 %v303_v12, %v303_v12 }
 0x111   :  { %v537_v20 = vadd.f32 %v536_v5, %v522_v15  ;;  %v644_v21 = vpack.c.bf16 %v274_v16, %v271_v8  ;;  %v500_v22 = vadd.f32 %v499_v14, %v274_v16  ;;  %v523_v23 = vmul.f32 %v274_v16, %v274_v16 }
 0x112   :  { %v664_v24 = vpack.c.bf16 %v306_v19, %v303_v12  ;;  %v531_v1 = vmul.f32 %v306_v19, %v306_v19 }
 0x113   :  { %672 = vst [vmem:[%s919_s3 + $0x10] sm:$0xff] %v644_v21   ;;  %v538_v25 = vadd.f32 %v537_v20, %v523_v23 }
 0x114   :  { %v278_v26 = vpop.f32.mrb[12].mxu0  ;;  %676 = vst [vmem:[%s919_s3 + $0x30] sm:$0xff] %v664_v24   ;;  %v310_v27 = vpop.f32.mrb[12].mxu1 }
 0x115   :  { %v279_v28 = vadd.f32 %v850_v31, %v278_v26  ;;  %v280_v29 = vpop.f32.mrb[13].mxu0  ;;  %v312_v30 = vpop.f32.mrb[13].mxu1  ;;  %v311_v33 = vadd.f32 %v850_v31, %v310_v27 }
 0x116   :  { %v281_v32 = vpop.f32.mrb[14].mxu0  ;;  %v313_v34 = vpop.f32.mrb[14].mxu1 }
 0x117   :  { %v501_v35 = vadd.f32 %v500_v22, %v279_v28  ;;  %v524_v37 = vmul.f32 %v279_v28, %v279_v28  ;;  %v282_v38 = vadd.f32 %v850_v31, %v281_v32  ;;  %v283_v39 = vpop.f32.mrb[15].mxu0  ;;  %v315_v40 = vpop.f32.mrb[15].mxu1  ;;  %v314_v41 = vadd.f32 %v850_v31, %v313_v34 }
 0x118   :  { %v527_v31 = vmul.f32 %v858_v42, %v858_v42  ;;  %v532_v2 = vmul.f32 %v311_v33, %v311_v33 }
 0x119   :  { %v539_v43 = vadd.f32 %v538_v25, %v524_v37  ;;  %v649_v44 = vpack.c.bf16 %v282_v38, %v279_v28  ;;  %v502_v45 = vadd.f32 %v501_v35, %v282_v38  ;;  %v525_v46 = vmul.f32 %v282_v38, %v282_v38 }
 0x11a   :  { %v669_v47 = vpack.c.bf16 %v314_v41, %v311_v33  ;;  %v533_v6 = vmul.f32 %v314_v41, %v314_v41 }
 0x11b   :  { %673 = vst [vmem:[%s919_s3 + $0x18] sm:$0xff] %v649_v44   ;;  %v503_v49 = vadd.f32 %v502_v45, %v854_v36  ;;  %v540_v50 = vadd.f32 %v539_v43, %v525_v46 }
 0x11c   :  { %677 = vst [vmem:[%s919_s3 + $0x38] sm:$0xff] %v669_v47  }
 0x11d   :  { %v504_v51 = vadd.f32 %v503_v49, %v858_v42  ;;  %v541_v52 = vadd.f32 %v540_v50, %v526_v48 }
 0x11f   :  { %v542_v54 = vadd.f32 %v541_v52, %v527_v31  ;;  %v505_v55 = vadd.f32 %v504_v51, %v870_v56 }
 0x121   :  { %v506_v58 = vadd.f32 %v505_v55, %v298_v63  ;;  %v543_v36 = vadd.f32 %v542_v54, %v528_v53 }
 0x123   :  { %v507_v59 = vadd.f32 %v506_v58, %v303_v12  ;;  %v544_v61 = vadd.f32 %v543_v36, %v529_v57 }
 0x125   :  { %v545_v62 = vadd.f32 %v544_v61, %v530_v60  ;;  %v508_v0 = vadd.f32 %v507_v59, %v306_v19 }
 0x127   :  { %v546_v3 = vadd.f32 %v545_v62, %v531_v1  ;;  %v509_v4 = vadd.f32 %v508_v0, %v311_v33 }
 0x129   :  { %v547_v42 = vadd.f32 %v546_v3, %v532_v2  ;;  %v510_v5 = vadd.f32 %v509_v4, %v314_v41 }
 0x12b   :  { %v511_v7 = vrot.slane %v510_v5, 4  ;;  %v548_v8 = vadd.f32 %v547_v42, %v533_v6 }
 0x12d   :  { %v512_v9 = vadd.f32 %v511_v7, %v510_v5  ;;  %v549_v10 = vrot.slane %v548_v8, 4 }
 0x12f   :  { %v513_v56 = vrot.slane %v512_v9, 2  ;;  %v550_v11 = vadd.f32 %v549_v10, %v548_v8 }
 0x131   :  { %v514_v63 = vadd.f32 %v513_v56, %v512_v9  ;;  %v551_v13 = vrot.slane %v550_v11, 2 }
 0x133   :  { %v515_v14 = vrot.slane %v514_v63, 1  ;;  %v552_v12 = vadd.f32 %v551_v13, %v550_v11 }
 0x135   :  { %v516_v15 = vadd.f32 %v515_v14, %v514_v63  ;;  %v553_v16 = vrot.slane %v552_v12, 1 }
 0x137   :  { %517 = vst [vmem:[%s920_s4] sm:$0x1] %v516_v15  ;;  %v554_v17 = vadd.f32 %v553_v16, %v552_v12 }
 0x139   :  { %555 = vst [vmem:[%s920_s4 + $0x1] sm:$0x1] %v554_v17 }

</bundles_post_ra>
